<compile_context>
chip_gen: v5e
topology: v5e:2x2
jax: 0.10.0
libtpu: 0.0.40
codegen_flags: <defaults>
</compile_context>

<pallas_src>
import functools

import jax
import jax.numpy as jnp
from jax.experimental import pallas as pl
from jax.experimental.pallas import tpu as pltpu

_LANE = 128


def _round_up(x, m):
    return ((x + m - 1) // m) * m


def _vmem_limit(resident_bytes):
    # vmem_limit_bytes is a ceiling, not an allocation: floor at the 32 MiB
    # default so tiny problems are unaffected; keep below physical VMEM.
    return int(min(max(resident_bytes + (8 << 20), 32 << 20), 96 << 20))


# ---------------------------------------------------------------------------
# Kernel 1: row-tiled MLP  h = (relu(x @ W1t + b1)) @ W2t + b2
# ---------------------------------------------------------------------------
def _mlp_kernel(x_ref, w1t_ref, b1_ref, w2t_ref, b2_ref, h_ref):
    # lin1 + relu: bf16 operands, f32 MXU accumulation.
    h1 = jnp.dot(x_ref[...], w1t_ref[...],
                 preferred_element_type=jnp.float32) + b1_ref[...]
    h1 = jnp.maximum(h1, 0.0)
    # lin2 -> [tm, C_pad] lane-dense (padded hidden rows of W2t are zero, padded
    # class columns of W2t / b2 are zero, so pad lanes of h stay exactly 0).
    h2 = jnp.dot(h1.astype(jnp.bfloat16), w2t_ref[...],
                 preferred_element_type=jnp.float32) + b2_ref[...]
    h_ref[...] = h2


# ---------------------------------------------------------------------------
# Kernel 2: APPNP propagation (K unrolled steps, A resident) + log_softmax
# ---------------------------------------------------------------------------
def _prop_kernel(h_ref, a_ref, out_ref, *, K, alpha, num_classes):
    h = h_ref[...]                       # [N_pad, C_pad] f32
    ah = alpha * h                       # hoisted loop invariant
    a = a_ref[...]                       # [N_pad, N_pad] bf16, pre-scaled by (1-alpha)
    z = h
    for _ in range(K):                   # K is static -> fully unrolled MXU chain
        z = jnp.dot(a, z.astype(jnp.bfloat16),
                    preferred_element_type=jnp.float32) + ah

    # Mask the padded class lanes only here (they carried exact zeros through
    # the propagation), then log_softmax over the real classes.
    col = jax.lax.broadcasted_iota(jnp.int32, z.shape, 1)
    z = jnp.where(col < num_classes, z, -1.0e30)
    m = jnp.max(z, axis=1, keepdims=True)
    s = z - m
    lse = jnp.log(jnp.sum(jnp.exp(s), axis=1, keepdims=True))
    out_ref[...] = s - lse


def appnp_net_forward(x, w1, b1, w2, b2, a_hat, *, K, alpha, row_tile=512):
    """x: [N, F], w1: [H, F], b1: [H], w2: [C, H], b2: [C], a_hat: [N, N]."""
    n, f = x.shape
    hdim = w1.shape[0]
    c = w2.shape[0]

    c_pad = _round_up(c, _LANE)          # exactly 128 for c <= 128 (don't over-pad)
    h_pad = _round_up(hdim, _LANE)
    tm = min(_round_up(row_tile, 8), _round_up(n, 8))
    n_pad = _round_up(n, tm)

    f32, bf16 = jnp.float32, jnp.bfloat16

    # ---- one-time layout / dtype prep outside the kernels --------------------
    x_p = jnp.zeros((n_pad, f), f32).at[:n, :].set(jnp.asarray(x, f32)).astype(bf16)
    w1t = jnp.zeros((f, h_pad), f32).at[:, :hdim].set(
        jnp.asarray(w1, f32).T).astype(bf16)                          # [F, H_pad]
    b1r = jnp.zeros((1, h_pad), f32).at[0, :hdim].set(jnp.asarray(b1, f32))
    w2t = jnp.zeros((h_pad, c_pad), f32).at[:hdim, :c].set(
        jnp.asarray(w2, f32).T).astype(bf16)                          # [H_pad, C_pad]
    b2r = jnp.zeros((1, c_pad), f32).at[0, :c].set(jnp.asarray(b2, f32))
    # (1 - alpha) folded into A here; bf16 halves its VMEM/HBM footprint.
    a_p = jnp.zeros((n_pad, n_pad), f32).at[:n, :n].set(
        (1.0 - alpha) * jnp.asarray(a_hat, f32)).astype(bf16)

    # ---- call 1: row-tiled MLP ------------------------------------------------
    grid = (n_pad // tm,)
    mlp_resident = (2 * tm * f * 2 + f * h_pad * 2 + h_pad * 4
                    + h_pad * c_pad * 2 + c_pad * 4
                    + 2 * tm * c_pad * 4 + tm * h_pad * 4)
    mlp_cost = pl.CostEstimate(
        flops=int(2 * n_pad * f * h_pad + 2 * n_pad * h_pad * c_pad),
        transcendentals=0,
        bytes_accessed=int(n_pad * f * 2 + f * h_pad * 2 + h_pad * 4
                           + h_pad * c_pad * 2 + c_pad * 4 + n_pad * c_pad * 4),
    )
    h = pl.pallas_call(
        _mlp_kernel,
        out_shape=jax.ShapeDtypeStruct((n_pad, c_pad), f32),
        grid=grid,
        in_specs=[
            pl.BlockSpec((tm, f), lambda i: (i, 0)),
            pl.BlockSpec((f, h_pad), lambda i: (0, 0)),      # resident across grid
            pl.BlockSpec((1, h_pad), lambda i: (0, 0)),
            pl.BlockSpec((h_pad, c_pad), lambda i: (0, 0)),
            pl.BlockSpec((1, c_pad), lambda i: (0, 0)),
        ],
        out_specs=pl.BlockSpec((tm, c_pad), lambda i: (i, 0)),
        compiler_params=pltpu.CompilerParams(
            dimension_semantics=("parallel",),               # megacore on v7x
            vmem_limit_bytes=_vmem_limit(mlp_resident)),
        cost_estimate=mlp_cost,
    )(x_p, w1t, b1r, w2t, b2r)

    # ---- call 2: APPNP propagation (A resident across all K steps) + softmax --
    prop_resident = n_pad * n_pad * 2 + 4 * n_pad * c_pad * 4
    prop_cost = pl.CostEstimate(
        flops=int(2 * K * n_pad * n_pad * c_pad + 3 * K * n_pad * c_pad
                  + 6 * n_pad * c_pad),
        transcendentals=int(n_pad * c_pad + n_pad),
        bytes_accessed=int(n_pad * n_pad * 2 + 2 * n_pad * c_pad * 4),
    )
    vmem = pl.BlockSpec(memory_space=pltpu.MemorySpace.VMEM)
    out_padded = pl.pallas_call(
        functools.partial(_prop_kernel, K=K, alpha=alpha, num_classes=c),
        out_shape=jax.ShapeDtypeStruct((n_pad, c_pad), f32),
        in_specs=[vmem, vmem],
        out_specs=vmem,
        compiler_params=pltpu.CompilerParams(
            vmem_limit_bytes=_vmem_limit(prop_resident)),
        cost_estimate=prop_cost,
    )(h, a_p)

    return out_padded[:n, :c]


def build_normalized_adjacency(edge_index, num_nodes):
    """Dense GCN-normalized adjacency with self-loops (what APPNP uses)."""
    src, dst = edge_index[0], edge_index[1]
    a = jnp.zeros((num_nodes, num_nodes), jnp.float32)
    # message flows src -> dst: row = target, col = source
    a = a.at[dst, src].set(1.0)
    # self-loops: SET the diagonal to 1 (robust to explicit self-loop edges;
    # PyG's add_self_loops would ADD on top of any explicit self-loop edge).
    diag = jnp.arange(num_nodes)
    a = a.at[diag, diag].set(1.0)
    deg = jnp.sum(a, axis=1)
    d_inv_sqrt = jnp.where(deg > 0, 1.0 / jnp.sqrt(deg), 0.0)
    return a * d_inv_sqrt[:, None] * d_inv_sqrt[None, :]


if __name__ == "__main__":
    # Small synthetic shapes consistent with the module.
    N = 64            # number of graph nodes
    F_IN = 16         # dataset.num_features
    HIDDEN = 32       # args.hidden
    C = 8             # dataset.num_classes
    K = 10            # args.K
    ALPHA = 0.1       # args.alpha
    ROW_TILE = 32     # small tile so the toy run exercises a multi-step grid

    key = jax.random.PRNGKey(0)
    kx, kw1, kb1, kw2, kb2 = jax.random.split(key, 5)

    x = jax.random.normal(kx, (N, F_IN), jnp.float32)

    # Deterministic torch.nn.Linear-style init: U(-1/sqrt(fan_in), 1/sqrt(fan_in))
    lim1 = 1.0 / jnp.sqrt(F_IN)
    w1 = jax.random.uniform(kw1, (HIDDEN, F_IN), jnp.float32, -lim1, lim1)
    b1 = jax.random.uniform(kb1, (HIDDEN,), jnp.float32, -lim1, lim1)
    lim2 = 1.0 / jnp.sqrt(HIDDEN)
    w2 = jax.random.uniform(kw2, (C, HIDDEN), jnp.float32, -lim2, lim2)
    b2 = jax.random.uniform(kb2, (C,), jnp.float32, -lim2, lim2)

    # Deterministic ring graph edge_index [2, E] (both directions).
    idx = jnp.arange(N)
    src = jnp.concatenate([idx, (idx + 1) % N])
    dst = jnp.concatenate([(idx + 1) % N, idx])
    edge_index = jnp.stack([src, dst], axis=0)

    a_hat = build_normalized_adjacency(edge_index, N)

    out = appnp_net_forward(x, w1, b1, w2, b2, a_hat,
                            K=K, alpha=ALPHA, row_tile=ROW_TILE)
    out = jax.block_until_ready(out)

    # Pure-JAX f32 reference (spec formulation).  Tolerance loosened because the
    # kernel uses bf16 matmul operands with f32 accumulation.
    h = jnp.maximum(x @ w1.T + b1, 0.0)
    h = h @ w2.T + b2
    z = h
    for _ in range(K):
        z = (1.0 - ALPHA) * (a_hat @ z) + ALPHA * h
    ref = jax.nn.log_softmax(z, axis=1)

    assert out.shape == (N, C)
    assert jnp.all(jnp.isfinite(out)), "non-finite output"
    assert jnp.allclose(out, ref, atol=5e-2, rtol=5e-2), "mismatch vs JAX reference"

    print("KERNEL_OK")
</pallas_src>

<mosaic_0001>
module attributes {stable_mosaic.version = 11 : i64} {
  func.func @_mlp_kernel(%arg0: i32, %arg1: memref<32x16xbf16, #tpu.memory_space<vmem>>, %arg2: memref<16x128xbf16, #tpu.memory_space<vmem>>, %arg3: memref<1x128xf32, #tpu.memory_space<vmem>>, %arg4: memref<128x128xbf16, #tpu.memory_space<vmem>>, %arg5: memref<1x128xf32, #tpu.memory_space<vmem>>, %arg6: memref<32x128xf32, #tpu.memory_space<vmem>>) attributes {dimension_semantics = [#tpu.dimension_semantics<parallel>], iteration_bounds = array<i64: 2>, scalar_prefetch = 0 : i64, scratch_operands = 0 : i64, tpu.core_type = #tpu.core_type<tc>, window_params = [{transform_indices = @transform_0, window_bounds = array<i64: 32, 16>}, {pipeline_mode = #tpu.pipeline_mode<synchronous>, transform_indices = @transform_1, window_bounds = array<i64: 16, 128>}, {pipeline_mode = #tpu.pipeline_mode<synchronous>, transform_indices = @transform_2, window_bounds = array<i64: 1, 128>}, {pipeline_mode = #tpu.pipeline_mode<synchronous>, transform_indices = @transform_3, window_bounds = array<i64: 128, 128>}, {pipeline_mode = #tpu.pipeline_mode<synchronous>, transform_indices = @transform_4, window_bounds = array<i64: 1, 128>}, {transform_indices = @transform_5, window_bounds = array<i64: 32, 128>}]} {
    %c0 = arith.constant 0 : index
    %c0_0 = arith.constant 0 : index
    %0 = vector.load %arg1[%c0, %c0_0] : memref<32x16xbf16, #tpu.memory_space<vmem>>, vector<32x16xbf16>
    %c0_1 = arith.constant 0 : index
    %c0_2 = arith.constant 0 : index
    %1 = vector.load %arg2[%c0_1, %c0_2] : memref<16x128xbf16, #tpu.memory_space<vmem>>, vector<16x128xbf16>
    %cst = arith.constant dense<0.000000e+00> : vector<32x128xf32>
    %2 = tpu.matmul %0, %1, %cst {dimension_numbers = #tpu.dot_dimension_numbers<[1], [0], [0], [1], [0, 0, 1, 1], [], []>} : vector<32x16xbf16>, vector<16x128xbf16>, vector<32x128xf32> -> vector<32x128xf32>
    %c0_3 = arith.constant 0 : index
    %c0_4 = arith.constant 0 : index
    %3 = vector.load %arg3[%c0_3, %c0_4] : memref<1x128xf32, #tpu.memory_space<vmem>>, vector<1x128xf32>
    %4 = vector.broadcast %3 : vector<1x128xf32> to vector<32x128xf32>
    %5 = arith.addf %2, %4 : vector<32x128xf32>
    %cst_5 = arith.constant 0.000000e+00 : f32
    %6 = vector.broadcast %cst_5 : f32 to vector<32x128xf32>
    %7 = arith.maximumf %5, %6 : vector<32x128xf32>
    %8 = arith.truncf %7 : vector<32x128xf32> to vector<32x128xbf16>
    %c0_6 = arith.constant 0 : index
    %c0_7 = arith.constant 0 : index
    %9 = vector.load %arg4[%c0_6, %c0_7] : memref<128x128xbf16, #tpu.memory_space<vmem>>, vector<128x128xbf16>
    %cst_8 = arith.constant dense<0.000000e+00> : vector<32x128xf32>
    %10 = tpu.matmul %8, %9, %cst_8 {dimension_numbers = #tpu.dot_dimension_numbers<[1], [0], [0], [1], [0, 0, 1, 1], [], []>} : vector<32x128xbf16>, vector<128x128xbf16>, vector<32x128xf32> -> vector<32x128xf32>
    %c0_9 = arith.constant 0 : index
    %c0_10 = arith.constant 0 : index
    %11 = vector.load %arg5[%c0_9, %c0_10] : memref<1x128xf32, #tpu.memory_space<vmem>>, vector<1x128xf32>
    %12 = vector.broadcast %11 : vector<1x128xf32> to vector<32x128xf32>
    %13 = arith.addf %10, %12 : vector<32x128xf32>
    %c0_11 = arith.constant 0 : index
    %c0_12 = arith.constant 0 : index
    %14 = vector.load %arg6[%c0_11, %c0_12] : memref<32x128xf32, #tpu.memory_space<vmem>>, vector<32x128xf32>
    tpu.vector_store %arg6[%c0_11, %c0_12], %13 {strides = array<i32>} : memref<32x128xf32, #tpu.memory_space<vmem>>, vector<32x128xf32>,
    return
  }
  func.func @transform_0(%arg0: i32) -> (i32, i32) {
    %c0_i32 = arith.constant 0 : i32
    %c0_i32_0 = arith.constant 0 : i32
    return %arg0, %c0_i32 : i32, i32
  }
  func.func @transform_1(%arg0: i32) -> (i32, i32) {
    %c0_i32 = arith.constant 0 : i32
    %c0_i32_0 = arith.constant 0 : i32
    %c0_i32_1 = arith.constant 0 : i32
    return %c0_i32, %c0_i32_0 : i32, i32
  }
  func.func @transform_2(%arg0: i32) -> (i32, i32) {
    %c0_i32 = arith.constant 0 : i32
    %c0_i32_0 = arith.constant 0 : i32
    %c0_i32_1 = arith.constant 0 : i32
    return %c0_i32, %c0_i32_0 : i32, i32
  }
  func.func @transform_3(%arg0: i32) -> (i32, i32) {
    %c0_i32 = arith.constant 0 : i32
    %c0_i32_0 = arith.constant 0 : i32
    %c0_i32_1 = arith.constant 0 : i32
    return %c0_i32, %c0_i32_0 : i32, i32
  }
  func.func @transform_4(%arg0: i32) -> (i32, i32) {
    %c0_i32 = arith.constant 0 : i32
    %c0_i32_0 = arith.constant 0 : i32
    %c0_i32_1 = arith.constant 0 : i32
    return %c0_i32, %c0_i32_0 : i32, i32
  }
  func.func @transform_5(%arg0: i32) -> (i32, i32) {
    %c0_i32 = arith.constant 0 : i32
    %c0_i32_0 = arith.constant 0 : i32
    return %arg0, %c0_i32 : i32, i32
  }
}

</mosaic_0001>

<bundles_post_ra>
// kernel: tpu_custom_call.1
= control target key start
LH: loop header
LB: loop body
LE: loop exit
PB: predicated region body
PF: predicated region fallthrough
CT: control target
= control target key end

     0   :  { %10 = vsyncpa [#allocation3], 0  ;;  %s855_s0 = inlined_call_operand.vmem [shape: bf16[64,16], index: 0, kind: input, shape index: {}]   ;;  %s856_s1 = inlined_call_operand.vmem [shape: bf16[16,128], index: 1, kind: input, shape index: {}]   ;;  %s857_s2 = inlined_call_operand.vmem [shape: f32[1,128], index: 2, kind: input, shape index: {}]   ;;  %s858_s3 = inlined_call_operand.hbm [shape: bf16[128,128], index: 3, kind: input, shape index: {}]   ;;  %s859_s4 = inlined_call_operand.vmem [shape: f32[1,128], index: 4, kind: input, shape index: {}]   ;;  %s860_s5 = inlined_call_operand.hbm [shape: f32[64,128], index: 5, kind: output, shape index: {}]  }
   0x1   :  { %11 = vsyncpa [#allocation4], 0 }
   0x2   :  { %13 = vsyncpa [#allocation4 + $0x1], 0  ;;  %s752_s18 = smov 0   ;;  %s754_s19 = smov 0  }
   0x3   :  { %s756_s20 = smov 0   ;;  %s758_s21 = smov 0  }
   0x4 LB: > { %s773_s22 = sadd.s32 4294967295, %s715_s21   ;;  %s483_s23 = sadd.s32 4294967294, %s715_s21   ;;  %s715_s21 = sphi %s758_s21, %s866_s21   ;;  %s711_s20 = sphi %s756_s20, %s865_s20   ;;  %s707_s19 = sphi %s754_s19, %s864_s19   ;;  %s703_s18 = sphi %s752_s18, %s863_s18  }
   0x5   : > { %s777_s24 = sadd.s32 1, %s715_s21   ;;  %s136_s25 = sadd.s32 1, %s711_s20 }
   0x6   : > { %s133_s26 = ssub.s32 %s715_s21, %s777_s24  ;;  %p146_p0 = scmp.ne.s32.totalorder %s711_s20, %s707_s19 }
   0x7   : > { %p134_p1 = scmp.eq.s32.totalorder %s133_s26, 0  ;;  %p147_p2 = scmp.eq.s32.totalorder %s773_s22, 1 }
   0x8   : > { %p152_p3 = scmp.ne.s32.totalorder %s707_s19, %s703_s18  ;;  %p153_p4 = scmp.eq.s32.totalorder %s483_s23, 1 }
   0x9   : > { %s788_s27 = scalar_select %p134_p1, %s711_s20, %s136_s25  }
   0xa   : > { %p790_p5 = por %p147_p2, %p146_p0  ;;  %p794_p6 = por %p153_p4, %p152_p3 }
   0xb   : > { %p484_p7 = scmp.ge.s32.totalorder %s715_s21, 1  ;;  %p160_p8 = scmp.lt.s32.totalorder %s715_s21, 3 }
   0xc   : > { %p577_p9 = scmp.eq.s32.totalorder %s773_s22, 0  ;;  %s177_s7 = sshll.u32 %s858_s3, 4  ;;  %s178_s7 = int_to_ptr.hbm [resolvable:$true] %s177_s7 }
   0xd   : > { %p161_p10 = pnand %p484_p7, %p160_p8  ;;  %s717_s8 = smov [#allocation2]  }
   0xe   : > { %s179_s9 = sshll.u32 %s717_s8, 4  ;;  %s718_s10 = smov 64   ;;  %s180_s9 = int_to_ptr.vmem [resolvable:$true] %s179_s9 }
   0xf   : > { %p569_p11 = pneg %p161_p10  ;;  %s719_s11 = smov 4  }
  0x10   : > { %207 = sbr.rel (%p161_p10) target bundleno = 331 (0x14b), region = 40 }
  0x11   : > { %p570_p12 = pnand %p577_p9, %p569_p11 }
  0x13   : > { %572 = dma.hbm_to_vmem [thread:$0]  (!%p570_p12), %s178_s7, 1024, %s180_s9, [#allocation3], %s718_s10, %s718_s10, %s719_s11  }
  0x15   : > { %694 = dma.done.wait (%p577_p9), [#allocation3], 1024  }
  0x16   : > { %696 = vsyncadd (%p577_p9), [#allocation3], 4294966272  ;;  %s490_s12 = sshll.u32 %s773_s22, 2  ;;  %v545_v0 = vld [vmem:[%s856_s1] sm:$0xff]  ;;  %v553_v2 = vld [vmem:[#allocation2 + $0x38] sm:$0xff]  ;;  %vm270_vm0 = vcmask 130048  }
  0x17   : > { %p237_p13 = scmp.lt.s32.totalorder %s490_s12, 7  ;;  %284 = vmatpush.bf16.msra.mxu0 %v545_v0  ;;  %370 = vmatpush.bf16.msra.mxu1 %v553_v2  ;;  %v552_v3 = vld [vmem:[#allocation2 + $0x30] sm:$0xff]  ;;  %v551_v4 = vld [vmem:[#allocation2 + $0x28] sm:$0xff]  ;;  %v550_v5 = vld [vmem:[#allocation2 + $0x20] sm:$0xff]  ;;  %s233_s30 = sand.u32 1, %s707_s19  }
  0x18   : > { %555 = vmatpush.bf16.msra.mxu2 %v553_v2  ;;  %v549_v7 = vld [vmem:[#allocation2 + $0x18] sm:$0xff]  ;;  %v548_v8 = vld [vmem:[#allocation2 + $0x10] sm:$0xff]  ;;  %v547_v9 = vld [vmem:[#allocation2 + $0x8] sm:$0xff]  ;;  %s489_s6 = sshll.u32 %s233_s30, 5  ;;  %s554_s10 = sshll.u32 %s773_s22, 5 }
  0x19   : > { %s868_s12 = smov (!%p237_p13, %s490_s12), 7  ;;  %v546_v10 = vld [vmem:[#allocation2] sm:$0xff]  ;;  %s235_s9 = scalar_lea.vmem [#allocation5], %s489_s6 }
  0x1a   : > { %s491_s13 = sshll.u32 %s868_s12, 2  ;;  %v617_v12 = vld [vmem:[%s857_s2] ss:$0 sm:$0xff]  ;;  %s406_s14 = sshll.u32 %s235_s9, 4  ;;  %s407_s14 = int_to_ptr.vmem [resolvable:$true] %s406_s14 }
  0x1b   : > { %s240_s16 = scalar_lea.vmem %s855_s0, %s491_s13  ;;  %371 = vmatpush.bf16.msra.mxu1 %v552_v3  ;;  %v618_v26 = vld [vmem:[%s859_s4] ss:$0 sm:$0xff]  ;;  %s405_s13 = scalar_lea.hbm %s860_s5, %s554_s10 }
  0x1c   : > { %v543_v1 = vld [vmem:[%s240_s16] sm:$0xff]  ;;  %556 = vmatpush.bf16.msra.mxu2 %v552_v3  ;;  %v544_v6 = vld [vmem:[%s240_s16 + $0x8] sm:$0xff]  ;;  %s408_s15 = sshll.u32 %s405_s13, 4  ;;  %s394_s16 = scalar_lea.sflag [#allocation4], %s233_s30  ;;  %s409_s15 = int_to_ptr.hbm [resolvable:$true] %s408_s15 }
  0x1d   : > { %504 = vmatmul.msk.bf16.vlgmr.msra.gmra.mxu0 %vm270_vm0, %v543_v1  ;;  %s663_s17 = sshra.s32 %s409_s15, 4  ;;  %s669_s26 = scalar_lea.hbm %s860_s5, 64  ;;  %s664_s17 = int_to_ptr.hbm [resolvable:$true] %s663_s17 }
  0x1e   : > { %s665_s23 = scalar_lea.hbm %s664_s17, 32  ;;  %p670_p3 = scmp.lt.s32.totalorder %s664_s17, %s860_s5 }
  0x1f   : > { %372 = vmatpush.bf16.msra.mxu1 %v551_v4  ;;  %p666_p0 = scmp.ne.s32.totalorder %s664_s17, %s665_s23  ;;  %p671_p4 = scmp.lt.s32.totalorder %s669_s26, %s665_s23 }
  0x20   : > { %557 = vmatpush.bf16.msra.mxu2 %v551_v4 }
  0x21   : > { %p667_p1 = pnand %p666_p0, %p790_p5  ;;  %p672_p7 = por %p671_p4, %p670_p3 }
  0x23   : > { %373 = vmatpush.bf16.msra.mxu1 %v550_v5  ;;  %p668_p2 = pneg %p667_p1 }
  0x24   : > { %558 = vmatpush.bf16.msra.mxu2 %v550_v5 }
  0x25   : > { %p673_p8 = pnand %p672_p7, %p668_p2 }
  0x27   : > { %374 = vmatpush.bf16.msra.mxu1 %v549_v7 }
  0x28   : > { %559 = vmatpush.bf16.msra.mxu2 %v549_v7 }
  0x2b   : > { %375 = vmatpush.bf16.msra.mxu1 %v548_v8 }
  0x2c   : > { %560 = vmatpush.bf16.msra.mxu2 %v548_v8 }
  0x2d   : > { %505 = vmatmul.msk.bf16.gmra.mxu0 %vm270_vm0, %v544_v6 }
  0x2f   : > { %376 = vmatpush.bf16.msra.mxu1 %v547_v9 }
  0x30   : > { %561 = vmatpush.bf16.msra.mxu2 %v547_v9 }
  0x33   : > { %377 = vmatpush.bf16.msra.mxu1 %v546_v10 }
  0x34   : > { %562 = vmatpush.bf16.msra.mxu2 %v546_v10 }
  0x9a   : > { %v286_v11 = vpop.f32.mrf.mxu0 }
  0x9b   : > { %v287_v13 = vadd.f32 %v617_v12, %v286_v11 }
  0x9d   : > { %v296_v16 = vmax.f32 %v287_v13, 0.0 }
  0xa2   : > { %v288_v14 = vpop.f32.mrf.mxu0 }
  0xa3   : > { %v289_v15 = vadd.f32 %v617_v12, %v288_v14 }
  0xa5   : > { %v297_v17 = vmax.f32 %v289_v15, 0.0 }
  0xa7   : > { %v300_v18 = vpack.c.bf16 %v297_v17, %v296_v16 }
  0xa9   : > { %378 = vmatmul.bf16.vlgmr.msra.gmra.mxu1 %v300_v18 }
  0xaa   : > { %v291_v19 = vpop.f32.mrf.mxu0 }
  0xab   : > { %v292_v20 = vadd.f32 %v617_v12, %v291_v19 }
  0xad   : > { %v298_v23 = vmax.f32 %v292_v20, 0.0 }
  0xb2   : > { %v293_v21 = vpop.f32.mrf.mxu0 }
  0xb3   : > { %v294_v22 = vadd.f32 %v617_v12, %v293_v21 }
  0xb5   : > { %v299_v24 = vmax.f32 %v294_v22, 0.0 }
  0xb7   : > { %v301_v25 = vpack.c.bf16 %v299_v24, %v298_v23 }
  0xb9   : > { %383 = vmatmul.bf16.vlgmr.msra.gmra.mxu2 %v301_v25 }
 0x126   : > { %v379_v27 = vpop.f32.mrf.mxu1 }
 0x127   : > { %v380_v28 = vadd.f32 %v618_v26, %v379_v27 }
 0x129   : > { %389 = vst [vmem:[%s235_s9] sm:$0xff] %v380_v28 }
 0x12e   : > { %v381_v29 = vpop.f32.mrf.mxu1 }
 0x12f   : > { %v382_v30 = vadd.f32 %v618_v26, %v381_v29 }
 0x131   : > { %390 = vst [vmem:[%s235_s9 + $0x8] sm:$0xff] %v382_v30 }
 0x13c   : > { %v384_v31 = vpop.f32.mrf.mxu2 }
 0x13d   : > { %v385_v32 = vadd.f32 %v618_v26, %v384_v31 }
 0x13f   : > { %391 = vst [vmem:[%s235_s9 + $0x10] sm:$0xff] %v385_v32 }
 0x144   : > { %v386_v33 = vpop.f32.mrf.mxu2 }
 0x145   : > { %v387_v34 = vadd.f32 %v618_v26, %v386_v33 }
 0x147   : > { %392 = vst [vmem:[%s235_s9 + $0x18] sm:$0xff] %v387_v34 }
 0x148   : > { %676 = shalt.err (!%p673_p8)
}
 0x149   : > { %s720_s30 = smov 128   ;;  %s721_s8 = smov 8  }
 0x14a   : > { %567 = dma.vmem_to_hbm [thread:$0]  (%p790_p5), %s407_s14, 512, %s409_s15, %s394_s16, %s720_s30, %s720_s30, %s721_s8  }
 0x14b PF: > { %p579_p9 = scmp.ge.s32.totalorder %s715_s21, 2  ;;  %s423_s9 = sand.u32 1, %s703_s18  }
 0x14c   : > { %s424_s10 = scalar_lea.sflag [#allocation4], %s423_s9 }
 0x14d   : > { %p574_p10 = pnand %p579_p9, %p794_p6 }
 0x14f   : > { %p575_p11 = pneg %p574_p10 }
 0x151   : > { %698 = dma.done.wait (%p575_p11), %s424_s10, 512  }
 0x152   : > { %700 = vsyncadd (%p575_p11), %s424_s10, 4294966784  ;;  %p16_p12 = scmp.ge.s32.totalorder %s777_s24, 4   ;;  %s863_s18 = smov %s707_s19 }
 0x153   : > { %s864_s19 = smov %s711_s20  ;;  %s865_s20 = smov %s788_s27 }
 0x154   : > { %s866_s21 = smov %s777_s24  ;;  %18 = sbr.rel (!%p16_p12) target bundleno = 4 (0x4), region = 80 }
 0x159   :  { %430 = vsyncpa [#allocation3], 1 }
 0x15a   :  { %432 = vsyncpa [#allocation3 + $0x1], 1 }
 0x15b   :  { %433 = vsyncpa [#allocation4], 1 }
 0x15c   :  { %435 = vsyncpa [#allocation4 + $0x1], 1 }

</bundles_post_ra>
